<compile_context>
chip_gen: v7x
topology: tpu7x:2x2x1
jax: 0.10.0
libtpu: 0.0.40
codegen_flags: <defaults>
</compile_context>

<pallas_src>
import functools
import random

import jax
import jax.numpy as jnp
import numpy as np
from jax.experimental import pallas as pl
from jax.experimental.pallas import tpu as pltpu


def _lighting_kernel(scale_ref, mask_ref, x_ref, o_ref):
    # scale_ref / mask_ref: VMEM (rb, 1) f32 per-frame brightness factor / apply flag.
    # x_ref / o_ref:        VMEM (rb, nb) lane-dense pixel block.
    x = x_ref[...].astype(jnp.float32)
    y = jnp.clip(x * scale_ref[...], 0.0, 1.0)
    o_ref[...] = jnp.where(mask_ref[...] > 0.0, y, x).astype(o_ref.dtype)


def _pick_blocks(t, n, itemsize, target_bytes=1 << 21):
    """Choose (row_block, lane_block) respecting the (8, 128) tiling rules."""
    # Lane (last) dim: keep full if small or not 128-aligned, else a 128-multiple tile.
    if n * itemsize <= target_bytes or n % 128 != 0:
        nb = n
    else:
        nb = max(128, (target_bytes // itemsize) // 128 * 128)
        nb = min(nb, n)
    # Row (second-last) dim: full extent if it fits / is tiny, else a multiple of 8.
    rows_per_block = max(1, target_bytes // max(1, nb * itemsize))
    if rows_per_block >= t or t <= 8:
        rb = t
    else:
        rb = max(8, (rows_per_block // 8) * 8)
        rb = min(rb, t)
        rb = (rb // 8) * 8
    return rb, nb


@functools.partial(jax.jit, static_argnums=(3, 4))
def _apply_lighting(x, scales, mask, rb, nb):
    """x: (T, C, H, W); scales/mask: (T, 1) f32 per-frame factor / apply flag."""
    t = x.shape[0]
    n = int(np.prod(x.shape[1:]))
    x_flat = x.reshape(t, n)
    grid = (pl.cdiv(t, rb), pl.cdiv(n, nb))
    out_flat = pl.pallas_call(
        _lighting_kernel,
        out_shape=jax.ShapeDtypeStruct((t, n), x.dtype),
        grid=grid,
        in_specs=[
            pl.BlockSpec((rb, 1), lambda i, j: (i, 0)),
            pl.BlockSpec((rb, 1), lambda i, j: (i, 0)),
            pl.BlockSpec((rb, nb), lambda i, j: (i, j)),
        ],
        out_specs=pl.BlockSpec((rb, nb), lambda i, j: (i, j)),
        compiler_params=pltpu.CompilerParams(
            dimension_semantics=("parallel", "parallel"),
        ),
    )(scales, mask, x_flat)
    return out_flat.reshape(x.shape)


def change_lighting(x, probability=1.0, intensity_std=0.5, decay_factor=1.1, seed=0):
    """JAX/Pallas equivalent of the PyTorch change_lighting forward."""
    T = x.shape[0]
    rng = random.Random(seed)  # deterministic host-side "randomness"
    # TODO(synk): the PyTorch module uses Python's global `random`; here it is a seeded
    # host-side RNG (scalar glue only — no in-kernel equivalent needed).

    if probability < rng.random():
        return x

    start_i = rng.randrange(T)
    factor = max(0.0, rng.gauss(1.0, intensity_std))

    # Per-frame factor schedule + apply mask (frames before start_i: scale 1, mask 0).
    scales = np.ones((T, 1), dtype=np.float32)
    mask = np.zeros((T, 1), dtype=np.float32)
    f = factor
    for i in range(start_i, T):
        scales[i, 0] = f
        mask[i, 0] = 1.0
        f = (f - 1.0) / decay_factor + 1.0

    n = int(np.prod(x.shape[1:]))
    rb, nb = _pick_blocks(T, n, np.dtype(x.dtype).itemsize)
    return _apply_lighting(x, jnp.asarray(scales), jnp.asarray(mask), rb, nb)


def _reference(x, probability=1.0, intensity_std=0.5, decay_factor=1.1, seed=0):
    """Pure-numpy reference mirroring the PyTorch loop (same RNG consumption order)."""
    x = np.array(x, dtype=np.float32)
    rng = random.Random(seed)
    if probability < rng.random():
        return x
    start_i = rng.randrange(x.shape[0])
    factor = max(0.0, rng.gauss(1.0, intensity_std))
    for i in range(start_i, x.shape[0]):
        x[i] = np.clip(x[i] * factor, 0.0, 1.0)
        factor = (factor - 1.0) / decay_factor + 1.0
    return x


if __name__ == "__main__":
    key = jax.random.PRNGKey(0)
    T, C, H, W = 4, 3, 16, 16
    # Values in [0, 2): exercises the clip branch AND verifies that frames before
    # start_i are left unclamped (values > 1 survive untouched).
    x = jax.random.uniform(key, (T, C, H, W), dtype=jnp.float32, minval=0.0, maxval=2.0)

    for seed in (0, 1, 2):
        out = change_lighting(x, probability=1.0, intensity_std=0.5,
                              decay_factor=1.1, seed=seed)
        out = jax.block_until_ready(out)
        ref = _reference(np.asarray(x), probability=1.0, intensity_std=0.5,
                         decay_factor=1.1, seed=seed)
        np.testing.assert_allclose(np.asarray(out), ref, rtol=1e-6, atol=1e-6)

    print("KERNEL_OK")
</pallas_src>

<mosaic_0001>
module attributes {stable_mosaic.version = 11 : i64} {
  func.func @_lighting_kernel(%arg0: i32, %arg1: i32, %arg2: memref<4x1xf32, #tpu.memory_space<vmem>>, %arg3: memref<4x1xf32, #tpu.memory_space<vmem>>, %arg4: memref<4x768xf32, #tpu.memory_space<vmem>>, %arg5: memref<4x768xf32, #tpu.memory_space<vmem>>) attributes {dimension_semantics = [#tpu.dimension_semantics<parallel>, #tpu.dimension_semantics<parallel>], iteration_bounds = array<i64: 1, 1>, scalar_prefetch = 0 : i64, scratch_operands = 0 : i64, tpu.core_type = #tpu.core_type<tc>, window_params = [{transform_indices = @transform_0, window_bounds = array<i64: 4, 1>}, {transform_indices = @transform_1, window_bounds = array<i64: 4, 1>}, {transform_indices = @transform_2, window_bounds = array<i64: 4, 768>}, {transform_indices = @transform_3, window_bounds = array<i64: 4, 768>}]} {
    %c0 = arith.constant 0 : index
    %c0_0 = arith.constant 0 : index
    %0 = vector.load %arg4[%c0, %c0_0] : memref<4x768xf32, #tpu.memory_space<vmem>>, vector<4x768xf32>
    %c0_1 = arith.constant 0 : index
    %c0_2 = arith.constant 0 : index
    %1 = vector.load %arg2[%c0_1, %c0_2] : memref<4x1xf32, #tpu.memory_space<vmem>>, vector<4x1xf32>
    %2 = vector.broadcast %1 : vector<4x1xf32> to vector<4x768xf32>
    %3 = arith.mulf %0, %2 : vector<4x768xf32>
    %cst = arith.constant 0.000000e+00 : f32
    %cst_3 = arith.constant 1.000000e+00 : f32
    %4 = vector.broadcast %cst : f32 to vector<4x768xf32>
    %5 = arith.maximumf %4, %3 : vector<4x768xf32>
    %6 = vector.broadcast %cst_3 : f32 to vector<4x768xf32>
    %7 = arith.minimumf %6, %5 : vector<4x768xf32>
    %c0_4 = arith.constant 0 : index
    %c0_5 = arith.constant 0 : index
    %8 = vector.load %arg3[%c0_4, %c0_5] : memref<4x1xf32, #tpu.memory_space<vmem>>, vector<4x1xf32>
    %cst_6 = arith.constant 0.000000e+00 : f32
    %9 = vector.broadcast %cst_6 : f32 to vector<4x1xf32>
    %10 = arith.cmpf ogt, %8, %9 : vector<4x1xf32>
    %11 = vector.shape_cast %10 : vector<4x1xi1> to vector<4x1xi1>
    %12 = vector.broadcast %11 : vector<4x1xi1> to vector<4x768xi1>
    %13 = arith.select %12, %7, %0 : vector<4x768xi1>, vector<4x768xf32>
    %c0_7 = arith.constant 0 : index
    %c0_8 = arith.constant 0 : index
    %14 = vector.load %arg5[%c0_7, %c0_8] : memref<4x768xf32, #tpu.memory_space<vmem>>, vector<4x768xf32>
    tpu.vector_store %arg5[%c0_7, %c0_8], %13 {strides = array<i32>} : memref<4x768xf32, #tpu.memory_space<vmem>>, vector<4x768xf32>,
    return
  }
  func.func @transform_0(%arg0: i32, %arg1: i32) -> (i32, i32) {
    %c0_i32 = arith.constant 0 : i32
    %c0_i32_0 = arith.constant 0 : i32
    return %arg0, %c0_i32 : i32, i32
  }
  func.func @transform_1(%arg0: i32, %arg1: i32) -> (i32, i32) {
    %c0_i32 = arith.constant 0 : i32
    %c0_i32_0 = arith.constant 0 : i32
    return %arg0, %c0_i32 : i32, i32
  }
  func.func @transform_2(%arg0: i32, %arg1: i32) -> (i32, i32) {
    %c0_i32 = arith.constant 0 : i32
    return %arg0, %arg1 : i32, i32
  }
  func.func @transform_3(%arg0: i32, %arg1: i32) -> (i32, i32) {
    %c0_i32 = arith.constant 0 : i32
    return %arg0, %arg1 : i32, i32
  }
}

</mosaic_0001>

<bundles_post_ra>
// kernel: _apply_lighting.1
= control target key start
LH: loop header
LB: loop body
LE: loop exit
PB: predicated region body
PF: predicated region fallthrough
CT: control target
= control target key end

     0   :  { %v95_v0 = vmov 0   ;;  %v96_v4 = vmov 839922192   ;;  %v25_v6 = vlaneseq  ;;  %s141_s1 = inlined_call_operand.vmem [shape: f32[4,1], index: 1, kind: input, shape index: {}]   ;;  %s142_s0 = inlined_call_operand.vmem [shape: f32[4,1], index: 0, kind: input, shape index: {}]   ;;  %s143_s2 = inlined_call_operand.vmem [shape: f32[4,768], index: 2, kind: input, shape index: {}]   ;;  %s144_s3 = inlined_call_operand.vmem [shape: f32[4,768], index: 3, kind: output, shape index: {}]  }
   0x1   :  { %91 = vset.pattern.permute.xlu0 %v95_v0  ;;  %v39_v1 = vld [vmem:[%s141_s1] sm:$0xf]  ;;  %v23_v5 = vunpack.c.l.s4 %v96_v4  ;;  %v15_v11 = vld [vmem:[%s143_s2 + $0x8] sm:$0xff]  ;;  %v16_v12 = vld [vmem:[%s143_s2 + $0x10] sm:$0xff] }
   0x2   :  { %v17_v2 = vld [vmem:[%s142_s0] sm:$0xf]  ;;  %vm40_vm0 = vcmp.gt.f32.partialorder %v39_v1, 0.0  ;;  %v26_v8 = vshrl.u32 %v25_v6, 7  ;;  %v59_v22 = vcombine.high %v15_v11, %v15_v11  ;;  %v60_v24 = vcombine.high %v16_v12, %v16_v12 }
   0x3   :  { %20 = vperm.xlu0 %91, %v17_v2   ;;  %v41_v3 = vsel %vm40_vm0, 1, %v95_v0  ;;  %v24_v7 = vunpack.c.0.s8 %v23_v5  ;;  %v14_v10 = vld [vmem:[%s143_s2] sm:$0xff] }
   0x4   :  { %v58_v21 = vcombine.high %v14_v10, %v14_v10 }
   0x5   :  { %v27_v9 = vsub.s32 %v24_v7, %v26_v8 }
   0x7   :  { %43 = vperm.xlu0 %91, %v41_v3  }
  0x82   :  { %v21_v13 = vpop.permute.xlu0 %20 }
  0x83   :  { %v28_v14 = vrot.slane %v21_v13, %v27_v9 }
  0x85   :  { %v30_v15 = vmul.f32 %v28_v14, %v14_v10  ;;  %v31_v16 = vmul.f32 %v28_v14, %v15_v11  ;;  %v32_v17 = vmul.f32 %v28_v14, %v16_v12 }
  0x86   :  { %v44_v23 = vpop.permute.xlu0 %43 }
  0x87   :  { %v33_v18 = vmax.f32 %v30_v15, 0.0  ;;  %v34_v19 = vmax.f32 %v31_v16, 0.0  ;;  %v35_v20 = vmax.f32 %v32_v17, 0.0  ;;  %vm45_vm1 = vcmp.eq.s32.totalorder %v44_v23, 1 }
  0x89   :  { %v36_v25 = vmin.f32 %v33_v18, 1.0  ;;  %v37_v26 = vmin.f32 %v34_v19, 1.0  ;;  %v38_v27 = vmin.f32 %v35_v20, 1.0 }
  0x8b   :  { %v49_v28 = vcombine.high %v36_v25, %v36_v25  ;;  %v50_v29 = vcombine.high %v37_v26, %v37_v26  ;;  %v51_v30 = vcombine.high %v38_v27, %v38_v27  ;;  %v64_v31 = vsel %vm45_vm1, %v36_v25, %v14_v10 }
  0x8c   :  { %v66_v32 = vsel %vm45_vm1, %v37_v26, %v15_v11  ;;  %v68_v35 = vsel %vm45_vm1, %v38_v27, %v16_v12 }
  0x8d   :  { %v65_v33 = vsel %vm45_vm1, %v49_v28, %v58_v21  ;;  %v67_v34 = vsel %vm45_vm1, %v50_v29, %v59_v22  ;;  %v69_v36 = vsel %vm45_vm1, %v51_v30, %v60_v24 }
  0x8e   :  { %v76_v37 = vcombine.low %v64_v31, %v65_v33  ;;  %v77_v38 = vcombine.low %v66_v32, %v67_v34  ;;  %v78_v39 = vcombine.low %v68_v35, %v69_v36 }
  0x90   :  { %82 = vst [vmem:[%s144_s3] sm:$0xff] %v76_v37  ;;  %83 = vst [vmem:[%s144_s3 + $0x8] sm:$0xff] %v77_v38 }
  0x91   :  { %84 = vst [vmem:[%s144_s3 + $0x10] sm:$0xff] %v78_v39 }

</bundles_post_ra>
